<compile_context>
chip_gen: v7x
topology: tpu7x:2x2x1
jax: 0.10.0
libtpu: 0.0.40
codegen_flags: <defaults>
</compile_context>

<pallas_src>
import jax
import jax.numpy as jnp
import numpy as np
from jax.experimental import pallas as pl
from jax.experimental.pallas import tpu as pltpu


# --------------------------------------------------------------------------------------
# Kernels
# --------------------------------------------------------------------------------------
def _eval_kernel(x_ref, pe_ref, o_ref):
    # x_ref: (TB, TC) tile of the flattened sequence, pe_ref: (1, TC) broadcast row.
    o_ref[...] = x_ref[...] + pe_ref[...]


def _make_train_kernel(p: float):
    """Fused add + inverted dropout.  Mask is built in the integer domain."""
    # drop iff bits < thr  ->  P(drop) ~= p ; keep iff bits >= thr.
    thr = np.uint32(min(2**32 - 1, int(round(p * 2.0**32))))
    inv_keep = 1.0 / (1.0 - p)

    def kernel(x_ref, pe_ref, bits_ref, o_ref):
        y = x_ref[...] + pe_ref[...]
        keep = bits_ref[...] >= jnp.uint32(thr)
        scaled = y * jnp.asarray(inv_keep, dtype=y.dtype)
        o_ref[...] = jnp.where(keep, scaled, jnp.zeros_like(scaled))

    return kernel


# --------------------------------------------------------------------------------------
# Tiling helper
# --------------------------------------------------------------------------------------
def _tile_dims(rows: int, cols: int, itemsize: int, target_bytes: int = 1 << 20):
    """Pick a (row, col) block for a 2-D (rows, cols) array.

    Each block dim must be a multiple of (8, 128) or equal the full extent.
    Aim for ~target_bytes per block so each grid step moves enough data to hide the
    per-step overhead while double-buffered x/bits/pe/out stay well under the default
    scoped-VMEM limits on all TPU generations.
    """
    # Column tile (lane axis).
    if cols % 128 != 0:
        tc = cols                                            # must use full extent
    else:
        max_tc = max(128, (target_bytes // (8 * itemsize)) // 128 * 128)
        tc = 128
        for cand in range(min(cols, max_tc) // 128 * 128, 127, -128):
            if cols % cand == 0:
                tc = cand
                break
    # Row tile (sublane axis).
    if rows % 8 != 0:
        tb = rows                                            # must use full extent
    else:
        max_tb = max(8, (target_bytes // (tc * itemsize)) // 8 * 8)
        tb = 8
        for cand in range(min(rows, max_tb) // 8 * 8, 7, -8):
            if rows % cand == 0:
                tb = cand
                break
    return tb, tc


# --------------------------------------------------------------------------------------
# Wrapper
# --------------------------------------------------------------------------------------
def bert_embedding3(sequence, pe, *, p: float = 0.1, training: bool = False, rng_key=None):
    """Pallas implementation of BERTEmbedding3.forward.

    sequence: (B, S, D) array
    pe:       (max_len, D) learned positional-embedding parameter, max_len >= S
    rng_key:  jax PRNG key for dropout (training only); pass a fresh key each step to
              match nn.Dropout's fresh-randomness-per-call semantics.
    """
    B, S, D = sequence.shape
    assert pe.shape[0] >= S and pe.shape[1] == D
    C = S * D

    # Lane-dense flattening (glue, plain JAX): (B, S, D) -> (B, S*D); pe -> (1, S*D).
    x2 = sequence.reshape(B, C)
    pe2 = pe[:S].astype(sequence.dtype).reshape(1, C)

    tb, tc = _tile_dims(B, C, jnp.dtype(sequence.dtype).itemsize)
    grid = (B // tb, C // tc)

    x_spec = pl.BlockSpec((tb, tc), lambda b, c: (b, c))
    pe_spec = pl.BlockSpec((1, tc), lambda b, c: (0, c))
    out_spec = pl.BlockSpec((tb, tc), lambda b, c: (b, c))

    use_dropout = bool(training) and p > 0.0
    if use_dropout:
        assert 0.0 < p < 1.0, "dropout probability must be in [0, 1)"
        if rng_key is None:
            rng_key = jax.random.PRNGKey(0)
        # Random bits drawn outside the kernel (portable: works on TPU and in interpret).
        bits = jax.random.bits(rng_key, (B, C), dtype=jnp.uint32)
        kernel = _make_train_kernel(float(p))
        in_specs = [x_spec, pe_spec, pl.BlockSpec((tb, tc), lambda b, c: (b, c))]
        args = (x2, pe2, bits)
    else:
        kernel = _eval_kernel
        in_specs = [x_spec, pe_spec]
        args = (x2, pe2)

    out = pl.pallas_call(
        kernel,
        out_shape=jax.ShapeDtypeStruct((B, C), sequence.dtype),
        grid=grid,
        in_specs=in_specs,
        out_specs=out_spec,
        compiler_params=pltpu.CompilerParams(
            dimension_semantics=("parallel", "parallel")),
    )(*args)
    return out.reshape(B, S, D)


# --------------------------------------------------------------------------------------
# Self-test
# --------------------------------------------------------------------------------------
if __name__ == "__main__":
    # Small shapes consistent with the module: B=2, S=8 (<= max_len=16), D(input_dim)=32.
    B, S, D, MAX_LEN = 2, 8, 32, 16
    P_DROP = 0.1

    key = jax.random.PRNGKey(0)
    k_x, k_pe, k_drop = jax.random.split(key, 3)
    x = jax.random.normal(k_x, (B, S, D), dtype=jnp.float32)
    # Deterministic synthetic weights for the learned positional embedding.
    pe = jax.random.normal(k_pe, (MAX_LEN, D), dtype=jnp.float32) * 0.02

    ref = x + pe[:S][None, :, :]

    # Eval mode: dropout == identity.
    out_eval = jax.block_until_ready(bert_embedding3(x, pe, p=P_DROP, training=False))
    assert np.allclose(np.asarray(out_eval), np.asarray(ref), atol=1e-6, rtol=1e-6)

    # Training mode: every element must be either 0 (dropped) or ref / (1 - p) (kept).
    out_train = jax.block_until_ready(
        bert_embedding3(x, pe, p=P_DROP, training=True, rng_key=k_drop))
    assert out_train.shape == (B, S, D)
    ot = np.asarray(out_train)
    rf = np.asarray(ref)
    ok = np.isclose(ot, 0.0) | np.isclose(ot, rf / (1.0 - P_DROP), atol=1e-5)
    assert ok.all()

    print("KERNEL_OK")
</pallas_src>

<mosaic_0001>
module attributes {stable_mosaic.version = 11 : i64} {
  func.func @_eval_kernel(%arg0: i32, %arg1: i32, %arg2: memref<2x256xf32, #tpu.memory_space<vmem>>, %arg3: memref<1x256xf32, #tpu.memory_space<vmem>>, %arg4: memref<2x256xf32, #tpu.memory_space<vmem>>) attributes {dimension_semantics = [#tpu.dimension_semantics<parallel>, #tpu.dimension_semantics<parallel>], iteration_bounds = array<i64: 1, 1>, scalar_prefetch = 0 : i64, scratch_operands = 0 : i64, tpu.core_type = #tpu.core_type<tc>, window_params = [{transform_indices = @transform_0, window_bounds = array<i64: 2, 256>}, {transform_indices = @transform_1, window_bounds = array<i64: 1, 256>}, {transform_indices = @transform_2, window_bounds = array<i64: 2, 256>}]} {
    %c0 = arith.constant 0 : index
    %c0_0 = arith.constant 0 : index
    %0 = vector.load %arg2[%c0, %c0_0] : memref<2x256xf32, #tpu.memory_space<vmem>>, vector<2x256xf32>
    %c0_1 = arith.constant 0 : index
    %c0_2 = arith.constant 0 : index
    %1 = vector.load %arg3[%c0_1, %c0_2] : memref<1x256xf32, #tpu.memory_space<vmem>>, vector<1x256xf32>
    %2 = vector.broadcast %1 : vector<1x256xf32> to vector<2x256xf32>
    %3 = arith.addf %0, %2 : vector<2x256xf32>
    %c0_3 = arith.constant 0 : index
    %c0_4 = arith.constant 0 : index
    %4 = vector.load %arg4[%c0_3, %c0_4] : memref<2x256xf32, #tpu.memory_space<vmem>>, vector<2x256xf32>
    tpu.vector_store %arg4[%c0_3, %c0_4], %3 {strides = array<i32>} : memref<2x256xf32, #tpu.memory_space<vmem>>, vector<2x256xf32>,
    return
  }
  func.func @transform_0(%arg0: i32, %arg1: i32) -> (i32, i32) {
    %c0_i32 = arith.constant 0 : i32
    return %arg0, %arg1 : i32, i32
  }
  func.func @transform_1(%arg0: i32, %arg1: i32) -> (i32, i32) {
    %c0_i32 = arith.constant 0 : i32
    %c0_i32_0 = arith.constant 0 : i32
    return %c0_i32, %arg1 : i32, i32
  }
  func.func @transform_2(%arg0: i32, %arg1: i32) -> (i32, i32) {
    %c0_i32 = arith.constant 0 : i32
    return %arg0, %arg1 : i32, i32
  }
}

</mosaic_0001>

<bundles_post_ra>
// kernel: tpu_custom_call.1
= control target key start
LH: loop header
LB: loop body
LE: loop exit
PB: predicated region body
PF: predicated region fallthrough
CT: control target
= control target key end

     0   :  { %7 = vsyncpa [#allocation3], 0  ;;  %s157_s0 = inlined_call_operand.hbm [shape: f32[2,256], index: 0, kind: input, shape index: {}]   ;;  %s158_s1 = inlined_call_operand.vmem [shape: f32[1,256], index: 1, kind: input, shape index: {}]   ;;  %s159_s2 = inlined_call_operand.hbm [shape: f32[2,256], index: 2, kind: output, shape index: {}]  }
   0x1   :  { %8 = vsyncpa [#allocation4], 0  ;;  %s112_s9 = smov [#allocation2]   ;;  %s64_s13 = scalar_lea.hbm %s157_s0, 64 }
   0x2   :  { %s15_s10 = sshll.u32 %s112_s9, 4  ;;  %p65_p0 = scmp.ne.s32.totalorder %s157_s0, %s64_s13  ;;  %s16_s10 = int_to_ptr.vmem [resolvable:$true] %s15_s10 }
   0x3   :  { %p68_p1 = scmp.lt.u32.totalorder %s64_s13, %s157_s0 }
   0x5   :  { %p70_p2 = pnand %p68_p1, %p65_p0 }
   0x7   :  { %73 = shalt.err (!%p70_p2)
}
   0x8   :  { %s74_s18 = scalar_lea.vmem %s16_s10, 64  ;;  %p79_p4 = scmp.lt.s32.totalorder %s16_s10, %s16_s10 }
   0x9   :  { %p75_p3 = scmp.ne.s32.totalorder %s16_s10, %s74_s18  ;;  %p80_p5 = scmp.lt.s32.totalorder %s74_s18, %s74_s18 }
   0xb   :  { %p81_p6 = por %p80_p5, %p79_p4 }
   0xd   :  { %p82_p7 = pnand %p81_p6, %p75_p3 }
   0xf   :  { %85 = shalt.err (!%p82_p7)
}
  0x10   :  { %18 = dma.hbm_to_vmem [thread:$0]  %s157_s0, 64, %s16_s10, [#allocation3]  }
  0x11   :  { %108 = dma.done.wait [#allocation3], 64  }
  0x12   :  { %109 = vsyncadd [#allocation3], 4294967232  ;;  %v27_v0 = vlaneseq  ;;  %v113_v1 = vmov 1983009808   ;;  %v25_v7 = vld [vmem:[%s158_s1] sm:$0x3] }
  0x13   :  { %v37_v2 = vunpack.c.l.s4 %v113_v1  ;;  %v24_v12 = vld [vmem:[#allocation2] sm:$0xf]  ;;  %s114_s23 = smov [#allocation5]  }
  0x14   :  { %v28_v3 = vshrl.u32 %v27_v0, 7  ;;  %s52_s0 = sshll.u32 %s114_s23, 4  ;;  %s53_s0 = int_to_ptr.vmem [resolvable:$true] %s52_s0 }
  0x15   :  { %v38_v6 = vunpack.c.0.s8 %v37_v2  ;;  %s86_s24 = scalar_lea.vmem %s53_s0, 64  ;;  %p91_p9 = scmp.lt.s32.totalorder %s53_s0, %s53_s0 }
  0x16   :  { %v29_v4 = vsub.s32 0, %v28_v3  ;;  %v33_v5 = vsub.s32 1, %v28_v3  ;;  %p87_p8 = scmp.ne.s32.totalorder %s53_s0, %s86_s24  ;;  %p92_p10 = scmp.lt.s32.totalorder %s86_s24, %s86_s24 }
  0x17   :  { %v41_v10 = vsub.s32 %v38_v6, %v28_v3 }
  0x18   :  { %v30_v8 = vrot.slane %v25_v7, %v29_v4  ;;  %v34_v9 = vrot.slane %v25_v7, %v33_v5  ;;  %p93_p11 = por %p92_p10, %p91_p9 }
  0x1a   :  { %v35_v11 = vcombine.low %v30_v8, %v34_v9  ;;  %p94_p12 = pnand %p93_p11, %p87_p8 }
  0x1c   :  { %v42_v13 = vrot.slane %v35_v11, %v41_v10 }
  0x1e   :  { %v44_v14 = vadd.f32 %v42_v13, %v24_v12 }
  0x20   :  { %45 = vst [vmem:[#allocation5] sm:$0xf] %v44_v14 }
  0x21   :  { %97 = shalt.err (!%p94_p12)
}
  0x22   :  { %s98_s26 = scalar_lea.hbm %s159_s2, 64 }
  0x23   :  { %p99_p13 = scmp.ne.s32.totalorder %s159_s2, %s98_s26  ;;  %p102_p0 = scmp.lt.u32.totalorder %s98_s26, %s159_s2 }
  0x25   :  { %p104_p1 = pnand %p102_p0, %p99_p13 }
  0x27   :  { %107 = shalt.err (!%p104_p1)
}
  0x28   :  { %55 = dma.vmem_to_hbm [thread:$0]  %s53_s0, 64, %s159_s2, [#allocation4]  }
  0x29   :  { %110 = dma.done.wait [#allocation4], 64  }
  0x2a   :  { %111 = vsyncadd [#allocation4], 4294967232 }
  0x2b   :  { %59 = vsyncpa [#allocation3], 1 }
  0x2c   :  { %60 = vsyncpa [#allocation4], 1 }

</bundles_post_ra>
